<compile_context>
chip_gen: v6e
topology: v6e:2x2x1
jax: 0.10.0
libtpu: 0.0.40
codegen_flags: <defaults>
</compile_context>

<pallas_src>
import functools

import jax
import jax.numpy as jnp
from jax import lax
from jax.experimental import pallas as pl
from jax.experimental.pallas import tpu as pltpu


def _round_up(x, m):
    return -(-x // m) * m


def _tpu_config():
    """Per-generation (vmem_capacity_bytes, vmem_limit_bytes, num_tensorcores)."""
    kind = ""
    try:
        kind = jax.devices()[0].device_kind.lower()
    except Exception:
        pass
    two_tc = ("7" in kind) or ("v4" in kind) or ("v5p" in kind)
    if "7" in kind:                                   # v7x: 64 MiB VMEM per TC
        return 64 << 20, 48 << 20, 2
    if ("v6" in kind) or ("v5" in kind) or ("v4" in kind):
        return 128 << 20, 96 << 20, (2 if two_tc else 1)
    return 64 << 20, 48 << 20, (2 if two_tc else 1)   # unknown: conservative


# ---------------------------------------------------------------------------
# Kernel 1: LHS = [2*sigma*xt, -sigma] with sigma = exp(MLP(xt)), row-tiled.
# ---------------------------------------------------------------------------
def _mlp_lhs_kernel(x_ref, *wb_and_out):
    *wb_refs, o_ref = wb_and_out
    n_lin = len(wb_refs) // 2
    x = x_ref[...]                                    # (tile_m, Dx)
    h = x
    for i in range(n_lin):
        w = wb_refs[2 * i][...]                       # (d_in, d_out)
        b = wb_refs[2 * i + 1][...]                   # (1, d_out)
        h = jnp.dot(h, w, preferred_element_type=jnp.float32) + b
        if i < n_lin - 1:
            h = jnp.maximum(h, 0.0)                   # ReLU on hidden layers
    sigma = jnp.exp(h)                                # (tile_m, Dx)
    dx = x.shape[-1]
    o_ref[:, :dx] = 2.0 * sigma * x                   # folded factor-of-2
    o_ref[:, dx:] = -sigma


def mlp_lhs(xt, mlp_params):
    """Compute LHS = [2*sigma*xt, -sigma] with one row-tiled pallas_call."""
    B, Nt, Dx = xt.shape
    rows = B * Nt
    x2 = xt.reshape(rows, Dx).astype(jnp.float32)

    if rows <= 1024:
        tile_m = _round_up(rows, 8)
        rp = tile_m
    else:
        tile_m = 1024
        rp = _round_up(rows, tile_m)
    if rp != rows:
        x2 = jnp.pad(x2, ((0, rp - rows), (0, 0)))

    flat = []
    for w, b in mlp_params:
        flat += [w, b]

    in_specs = [pl.BlockSpec((tile_m, Dx), lambda i: (i, 0))]
    for p in flat:
        # Parameters: whole array, resident for every grid step.
        in_specs.append(pl.BlockSpec(p.shape, lambda i: (0, 0)))

    out = pl.pallas_call(
        _mlp_lhs_kernel,
        out_shape=jax.ShapeDtypeStruct((rp, 2 * Dx), jnp.float32),
        grid_spec=pltpu.PrefetchScalarGridSpec(
            num_scalar_prefetch=0,
            grid=(rp // tile_m,),
            in_specs=in_specs,
            out_specs=pl.BlockSpec((tile_m, 2 * Dx), lambda i: (i, 0)),
        ),
        compiler_params=pltpu.CompilerParams(dimension_semantics=("parallel",)),
    )(x2, *flat)
    return out[:rows].reshape(B, Nt, 2 * Dx)


# ---------------------------------------------------------------------------
# Kernel 2: GKA with flash-style online softmax over context chunks.
#   p[b,t,c] = 2*sum_d sig*xt*xc - sum_d sig*xc^2     (sig*xt^2 term dropped:
#              constant over the context axis, cancels in the softmax)
# ---------------------------------------------------------------------------
def _gka_kernel(xcT_ref, yca_ref, lhs_ref, o_ref, m_sc, acc_sc, *,
                dyc, nc_valid, ncc, masked):
    c = pl.program_id(2)

    @pl.when(c == 0)
    def _():
        m_sc[...] = jnp.full_like(m_sc, -jnp.inf)
        acc_sc[...] = jnp.zeros_like(acc_sc)

    # Single fused distance matmul: contract the 2*Dx axis, batch over Bt.
    # RHS is (Bt, 2*Dx, ncc) -> lane axis already = context, no transpose.
    dn = (((2,), (1,)), ((0,), (0,)))
    p = lax.dot_general(lhs_ref[...], xcT_ref[...], dn,
                        preferred_element_type=jnp.float32)      # (Bt, Ntt, ncc)

    if masked:  # only emitted when the context axis was padded
        col = c * ncc + lax.broadcasted_iota(jnp.int32, (1, 1, ncc), 2)
        p = jnp.where(col < nc_valid, p, -jnp.inf)

    # Online softmax accumulation over context chunks.
    m_prev = m_sc[...]
    m_new = jnp.maximum(m_prev, jnp.max(p, axis=-1, keepdims=True))
    alpha = jnp.exp(m_prev - m_new)
    e = jnp.exp(p - m_new)

    # e @ yc_aug: last column of yc_aug is 1, so the accumulator carries the
    # softmax denominator as its last column (no separate lane-reduce).
    acc_sc[...] = alpha * acc_sc[...] + lax.dot_general(
        e, yca_ref[...], dn, preferred_element_type=jnp.float32)
    m_sc[...] = m_new

    @pl.when(c == pl.num_programs(2) - 1)
    def _():
        acc = acc_sc[...]
        # Denominator >= 1 after the max subtraction -> approx recip is safe.
        inv = pl.reciprocal(acc[..., dyc:dyc + 1], approx=True)
        o_ref[...] = (acc[..., :dyc] * inv).astype(o_ref.dtype)


def _pick_bt(B, nt_tile, target_rows=512):
    """Largest divisor of B with bt*nt_tile <~ target_rows (at least 1)."""
    want = max(1, target_rows // max(nt_tile, 1))
    bt = 1
    for d in range(1, B + 1):
        if B % d == 0 and d <= want:
            bt = d
    return bt


def gka_forward(xc, yc, xt, mlp_params, *, nc_chunk=None):
    """mlp_params: list of (W, b) with b of shape (1, d_out)."""
    B, Nc, Dx = xc.shape
    _, _, Dyc = yc.shape
    _, Nt, _ = xt.shape

    vmem_cap, vmem_limit, n_tc = _tpu_config()

    # Distance-matmul LHS (sigma MLP hoisted out of the per-batch kernel).
    lhs = mlp_lhs(xt, mlp_params)                                 # (B, Nt, 2*Dx)

    # --- target tiling ---
    if Nt <= 512:
        nt_tile, nt_pad = Nt, Nt
    else:
        nt_tile = 512
        nt_pad = _round_up(Nt, nt_tile)

    bt = _pick_bt(B, nt_tile)

    # Only multi-TensorCore chips (v7x-like) need >= 2 parallel grid steps;
    # single-TC chips keep the largest per-step block (extra steps are pure
    # pipeline overhead there).
    if n_tc >= 2 and (B // bt) * (nt_pad // nt_tile) < 2:
        if B >= 2:
            for d in range(bt - 1, 0, -1):
                if B % d == 0 and B // d >= 2:
                    bt = d
                    break
        elif Nt > 8:
            nt_tile = _round_up(-(-Nt // 2), 8)
            nt_pad = _round_up(Nt, nt_tile)

    # --- context chunking (online softmax bounds VMEM independently of Nc) ---
    if nc_chunk is None:
        # ~4 live f32 (bt*nt_tile x ncc) temporaries must fit in ~1/3 of VMEM.
        budget = vmem_cap // 3
        max_ncc = max(128, (budget // (max(bt * nt_tile, 8) * 16)) // 128 * 128)
        ncc = Nc if Nc <= max_ncc else min(max_ncc, 2048)
    else:
        ncc = min(max(128, _round_up(nc_chunk, 128)), _round_up(Nc, 128))
    nc_pad = _round_up(Nc, ncc)
    masked = nc_pad != Nc

    # --- wrapper-side preprocessing (cheap one-off XLA ops) ---
    f32 = jnp.float32
    xc = xc.astype(f32)
    yc = yc.astype(f32)
    xc_aug_t = jnp.concatenate([xc, xc * xc], axis=-1).transpose(0, 2, 1)  # (B,2Dx,Nc)
    yc_aug = jnp.concatenate([yc, jnp.ones((B, Nc, 1), f32)], axis=-1)     # (B,Nc,Dyc+1)

    if nc_pad != Nc:
        xc_aug_t = jnp.pad(xc_aug_t, ((0, 0), (0, 0), (0, nc_pad - Nc)))
        yc_aug = jnp.pad(yc_aug, ((0, 0), (0, nc_pad - Nc), (0, 0)))
    if nt_pad != Nt:
        lhs = jnp.pad(lhs, ((0, 0), (0, nt_pad - Nt), (0, 0)))

    grid = (B // bt, nt_pad // nt_tile, nc_pad // ncc)

    kernel = functools.partial(_gka_kernel, dyc=Dyc, nc_valid=Nc, ncc=ncc,
                               masked=masked)

    out = pl.pallas_call(
        kernel,
        out_shape=jax.ShapeDtypeStruct((B, nt_pad, Dyc), jnp.float32),
        grid_spec=pltpu.PrefetchScalarGridSpec(
            num_scalar_prefetch=0,
            grid=grid,
            in_specs=[
                pl.BlockSpec((bt, 2 * Dx, ncc), lambda b, t, c: (b, 0, c)),
                pl.BlockSpec((bt, ncc, Dyc + 1), lambda b, t, c: (b, c, 0)),
                pl.BlockSpec((bt, nt_tile, 2 * Dx), lambda b, t, c: (b, t, 0)),
            ],
            out_specs=pl.BlockSpec((bt, nt_tile, Dyc), lambda b, t, c: (b, t, 0)),
            scratch_shapes=[
                pltpu.VMEM((bt, nt_tile, 1), jnp.float32),         # running max
                pltpu.VMEM((bt, nt_tile, Dyc + 1), jnp.float32),   # [acc, denom]
            ],
        ),
        compiler_params=pltpu.CompilerParams(
            dimension_semantics=("parallel", "parallel", "arbitrary"),
            vmem_limit_bytes=vmem_limit,
        ),
    )(xc_aug_t, yc_aug, lhs)

    return out[:, :Nt] if nt_pad != Nt else out


# ---------------------------------------------------------------------------
# Pure-JAX reference (mirrors the PyTorch forward exactly)
# ---------------------------------------------------------------------------
def gka_ref(xc, yc, xt, mlp_params):
    h = xt
    for i, (w, b) in enumerate(mlp_params):
        h = h @ w + b[0]
        if i < len(mlp_params) - 1:
            h = jax.nn.relu(h)
    sigma = jnp.exp(h)                                           # (B, Nt, Dx)
    A = (xc[:, :, None, :] - xt[:, None, :, :]) ** 2             # (B, Nc, Nt, Dx)
    P = -(A * sigma[:, None, :, :]).sum(-1)                      # (B, Nc, Nt)
    S = jax.nn.softmax(P, axis=1)
    return (yc[:, :, None, :] * S[:, :, :, None]).sum(1)         # (B, Nt, Dyc)


# ---------------------------------------------------------------------------
# Deterministic parameter init for MLP(dim_x -> dim_x, hidden dim_h, nlayers)
# ---------------------------------------------------------------------------
def init_mlp(key, dim_in, dim_out, dim_h, nlayers):
    dims = [dim_in] + [dim_h] * (nlayers - 1) + [dim_out]
    params = []
    for i in range(len(dims) - 1):
        key, kw, kb = jax.random.split(key, 3)
        scale = 1.0 / jnp.sqrt(dims[i])
        w = jax.random.uniform(kw, (dims[i], dims[i + 1]), jnp.float32, -scale, scale)
        b = jax.random.uniform(kb, (1, dims[i + 1]), jnp.float32, -scale, scale)
        params.append((w, b))
    return params


if __name__ == "__main__":
    key = jax.random.PRNGKey(0)

    # Test 1: small shapes consistent with the module; single-chunk fast path.
    B, Nc, Nt = 2, 16, 8
    dim_x, dim_yc, dim_yt, dim_h, nlayers = 4, 4, 4, 32, 4
    k_xc, k_yc, k_xt, k_mlp, key = jax.random.split(key, 5)
    xc = jax.random.normal(k_xc, (B, Nc, dim_x), jnp.float32)
    yc = jax.random.normal(k_yc, (B, Nc, dim_yc), jnp.float32)
    xt = jax.random.normal(k_xt, (B, Nt, dim_x), jnp.float32)
    mlp_params = init_mlp(k_mlp, dim_x, dim_x, dim_h, nlayers)

    out = jax.block_until_ready(gka_forward(xc, yc, xt, mlp_params))
    ref = gka_ref(xc, yc, xt, mlp_params)
    assert out.shape == (B, Nt, dim_yc)
    # Tolerance covers the approximate EUP reciprocal (approx=True); all other
    # math is exact f32 (real bugs would produce O(1) errors).
    assert jnp.allclose(out, ref, atol=5e-3, rtol=5e-3), "mismatch (test 1)"

    # Test 2: force the Nc-chunked online-softmax path (padding + 2 chunks).
    Nc2 = 200
    k_xc2, k_yc2, key = jax.random.split(key, 3)
    xc2 = jax.random.normal(k_xc2, (B, Nc2, dim_x), jnp.float32)
    yc2 = jax.random.normal(k_yc2, (B, Nc2, dim_yc), jnp.float32)
    out2 = jax.block_until_ready(
        gka_forward(xc2, yc2, xt, mlp_params, nc_chunk=128))
    ref2 = gka_ref(xc2, yc2, xt, mlp_params)
    assert out2.shape == (B, Nt, dim_yc)
    assert jnp.allclose(out2, ref2, atol=5e-3, rtol=5e-3), "mismatch (test 2)"

    print("KERNEL_OK")
</pallas_src>

<mosaic_0001>
module attributes {stable_mosaic.version = 11 : i64} {
  func.func @_mlp_lhs_kernel(%arg0: i32, %arg1: memref<16x4xf32, #tpu.memory_space<vmem>>, %arg2: memref<4x32xf32, #tpu.memory_space<vmem>>, %arg3: memref<1x32xf32, #tpu.memory_space<vmem>>, %arg4: memref<32x32xf32, #tpu.memory_space<vmem>>, %arg5: memref<1x32xf32, #tpu.memory_space<vmem>>, %arg6: memref<32x32xf32, #tpu.memory_space<vmem>>, %arg7: memref<1x32xf32, #tpu.memory_space<vmem>>, %arg8: memref<32x4xf32, #tpu.memory_space<vmem>>, %arg9: memref<1x4xf32, #tpu.memory_space<vmem>>, %arg10: memref<16x8xf32, #tpu.memory_space<vmem>>) attributes {dimension_semantics = [#tpu.dimension_semantics<parallel>], iteration_bounds = array<i64: 1>, scalar_prefetch = 0 : i64, scratch_operands = 0 : i64, tpu.core_type = #tpu.core_type<tc>, window_params = [{transform_indices = @transform_0, window_bounds = array<i64: 16, 4>}, {pipeline_mode = #tpu.pipeline_mode<synchronous>, transform_indices = @transform_1, window_bounds = array<i64: 4, 32>}, {pipeline_mode = #tpu.pipeline_mode<synchronous>, transform_indices = @transform_2, window_bounds = array<i64: 1, 32>}, {pipeline_mode = #tpu.pipeline_mode<synchronous>, transform_indices = @transform_3, window_bounds = array<i64: 32, 32>}, {pipeline_mode = #tpu.pipeline_mode<synchronous>, transform_indices = @transform_4, window_bounds = array<i64: 1, 32>}, {pipeline_mode = #tpu.pipeline_mode<synchronous>, transform_indices = @transform_5, window_bounds = array<i64: 32, 32>}, {pipeline_mode = #tpu.pipeline_mode<synchronous>, transform_indices = @transform_6, window_bounds = array<i64: 1, 32>}, {pipeline_mode = #tpu.pipeline_mode<synchronous>, transform_indices = @transform_7, window_bounds = array<i64: 32, 4>}, {pipeline_mode = #tpu.pipeline_mode<synchronous>, transform_indices = @transform_8, window_bounds = array<i64: 1, 4>}, {transform_indices = @transform_9, window_bounds = array<i64: 16, 8>}]} {
    %c0 = arith.constant 0 : index
    %c0_0 = arith.constant 0 : index
    %0 = vector.load %arg1[%c0, %c0_0] : memref<16x4xf32, #tpu.memory_space<vmem>>, vector<16x4xf32>
    %c0_1 = arith.constant 0 : index
    %c0_2 = arith.constant 0 : index
    %1 = vector.load %arg2[%c0_1, %c0_2] : memref<4x32xf32, #tpu.memory_space<vmem>>, vector<4x32xf32>
    %c0_3 = arith.constant 0 : index
    %c0_4 = arith.constant 0 : index
    %2 = vector.load %arg3[%c0_3, %c0_4] : memref<1x32xf32, #tpu.memory_space<vmem>>, vector<1x32xf32>
    %cst = arith.constant dense<0.000000e+00> : vector<16x32xf32>
    %3 = tpu.matmul %0, %1, %cst {dimension_numbers = #tpu.dot_dimension_numbers<[1], [0], [0], [1], [0, 0, 1, 1], [], []>} : vector<16x4xf32>, vector<4x32xf32>, vector<16x32xf32> -> vector<16x32xf32>
    %4 = vector.broadcast %2 : vector<1x32xf32> to vector<16x32xf32>
    %5 = arith.addf %3, %4 : vector<16x32xf32>
    %cst_5 = arith.constant 0.000000e+00 : f32
    %6 = vector.broadcast %cst_5 : f32 to vector<16x32xf32>
    %7 = arith.maximumf %5, %6 : vector<16x32xf32>
    %c0_6 = arith.constant 0 : index
    %c0_7 = arith.constant 0 : index
    %8 = vector.load %arg4[%c0_6, %c0_7] : memref<32x32xf32, #tpu.memory_space<vmem>>, vector<32x32xf32>
    %c0_8 = arith.constant 0 : index
    %c0_9 = arith.constant 0 : index
    %9 = vector.load %arg5[%c0_8, %c0_9] : memref<1x32xf32, #tpu.memory_space<vmem>>, vector<1x32xf32>
    %cst_10 = arith.constant dense<0.000000e+00> : vector<16x32xf32>
    %10 = tpu.matmul %7, %8, %cst_10 {dimension_numbers = #tpu.dot_dimension_numbers<[1], [0], [0], [1], [0, 0, 1, 1], [], []>} : vector<16x32xf32>, vector<32x32xf32>, vector<16x32xf32> -> vector<16x32xf32>
    %11 = vector.broadcast %9 : vector<1x32xf32> to vector<16x32xf32>
    %12 = arith.addf %10, %11 : vector<16x32xf32>
    %cst_11 = arith.constant 0.000000e+00 : f32
    %13 = vector.broadcast %cst_11 : f32 to vector<16x32xf32>
    %14 = arith.maximumf %12, %13 : vector<16x32xf32>
    %c0_12 = arith.constant 0 : index
    %c0_13 = arith.constant 0 : index
    %15 = vector.load %arg6[%c0_12, %c0_13] : memref<32x32xf32, #tpu.memory_space<vmem>>, vector<32x32xf32>
    %c0_14 = arith.constant 0 : index
    %c0_15 = arith.constant 0 : index
    %16 = vector.load %arg7[%c0_14, %c0_15] : memref<1x32xf32, #tpu.memory_space<vmem>>, vector<1x32xf32>
    %cst_16 = arith.constant dense<0.000000e+00> : vector<16x32xf32>
    %17 = tpu.matmul %14, %15, %cst_16 {dimension_numbers = #tpu.dot_dimension_numbers<[1], [0], [0], [1], [0, 0, 1, 1], [], []>} : vector<16x32xf32>, vector<32x32xf32>, vector<16x32xf32> -> vector<16x32xf32>
    %18 = vector.broadcast %16 : vector<1x32xf32> to vector<16x32xf32>
    %19 = arith.addf %17, %18 : vector<16x32xf32>
    %cst_17 = arith.constant 0.000000e+00 : f32
    %20 = vector.broadcast %cst_17 : f32 to vector<16x32xf32>
    %21 = arith.maximumf %19, %20 : vector<16x32xf32>
    %c0_18 = arith.constant 0 : index
    %c0_19 = arith.constant 0 : index
    %22 = vector.load %arg8[%c0_18, %c0_19] : memref<32x4xf32, #tpu.memory_space<vmem>>, vector<32x4xf32>
    %c0_20 = arith.constant 0 : index
    %c0_21 = arith.constant 0 : index
    %23 = vector.load %arg9[%c0_20, %c0_21] : memref<1x4xf32, #tpu.memory_space<vmem>>, vector<1x4xf32>
    %cst_22 = arith.constant dense<0.000000e+00> : vector<16x4xf32>
    %24 = tpu.matmul %21, %22, %cst_22 {dimension_numbers = #tpu.dot_dimension_numbers<[1], [0], [0], [1], [0, 0, 1, 1], [], []>} : vector<16x32xf32>, vector<32x4xf32>, vector<16x4xf32> -> vector<16x4xf32>
    %25 = vector.broadcast %23 : vector<1x4xf32> to vector<16x4xf32>
    %26 = arith.addf %24, %25 : vector<16x4xf32>
    %27 = math.exp %26 : vector<16x4xf32>
    %cst_23 = arith.constant 2.000000e+00 : f32
    %28 = vector.broadcast %cst_23 : f32 to vector<16x4xf32>
    %29 = arith.mulf %28, %27 : vector<16x4xf32>
    %30 = arith.mulf %29, %0 : vector<16x4xf32>
    %c0_24 = arith.constant 0 : index
    %c0_25 = arith.constant 0 : index
    %31 = vector.load %arg10[%c0_24, %c0_25] : memref<16x8xf32, #tpu.memory_space<vmem>>, vector<16x4xf32>
    tpu.vector_store %arg10[%c0_24, %c0_25], %30 {strides = array<i32>} : memref<16x8xf32, #tpu.memory_space<vmem>>, vector<16x4xf32>,
    %cst_26 = arith.constant 0.000000e+00 : f32
    %32 = vector.broadcast %cst_26 : f32 to vector<16x4xf32>
    %33 = arith.subf %32, %27 : vector<16x4xf32>
    %c0_27 = arith.constant 0 : index
    %c4 = arith.constant 4 : index
    %34 = vector.load %arg10[%c0_27, %c4] : memref<16x8xf32, #tpu.memory_space<vmem>>, vector<16x4xf32>
    tpu.vector_store %arg10[%c0_27, %c4], %33 {strides = array<i32>} : memref<16x8xf32, #tpu.memory_space<vmem>>, vector<16x4xf32>,
    return
  }
  func.func @transform_0(%arg0: i32) -> (i32, i32) {
    %c0_i32 = arith.constant 0 : i32
    %c0_i32_0 = arith.constant 0 : i32
    return %arg0, %c0_i32 : i32, i32
  }
  func.func @transform_1(%arg0: i32) -> (i32, i32) {
    %c0_i32 = arith.constant 0 : i32
    %c0_i32_0 = arith.constant 0 : i32
    %c0_i32_1 = arith.constant 0 : i32
    return %c0_i32, %c0_i32_0 : i32, i32
  }
  func.func @transform_2(%arg0: i32) -> (i32, i32) {
    %c0_i32 = arith.constant 0 : i32
    %c0_i32_0 = arith.constant 0 : i32
    %c0_i32_1 = arith.constant 0 : i32
    return %c0_i32, %c0_i32_0 : i32, i32
  }
  func.func @transform_3(%arg0: i32) -> (i32, i32) {
    %c0_i32 = arith.constant 0 : i32
    %c0_i32_0 = arith.constant 0 : i32
    %c0_i32_1 = arith.constant 0 : i32
    return %c0_i32, %c0_i32_0 : i32, i32
  }
  func.func @transform_4(%arg0: i32) -> (i32, i32) {
    %c0_i32 = arith.constant 0 : i32
    %c0_i32_0 = arith.constant 0 : i32
    %c0_i32_1 = arith.constant 0 : i32
    return %c0_i32, %c0_i32_0 : i32, i32
  }
  func.func @transform_5(%arg0: i32) -> (i32, i32) {
    %c0_i32 = arith.constant 0 : i32
    %c0_i32_0 = arith.constant 0 : i32
    %c0_i32_1 = arith.constant 0 : i32
    return %c0_i32, %c0_i32_0 : i32, i32
  }
  func.func @transform_6(%arg0: i32) -> (i32, i32) {
    %c0_i32 = arith.constant 0 : i32
    %c0_i32_0 = arith.constant 0 : i32
    %c0_i32_1 = arith.constant 0 : i32
    return %c0_i32, %c0_i32_0 : i32, i32
  }
  func.func @transform_7(%arg0: i32) -> (i32, i32) {
    %c0_i32 = arith.constant 0 : i32
    %c0_i32_0 = arith.constant 0 : i32
    %c0_i32_1 = arith.constant 0 : i32
    return %c0_i32, %c0_i32_0 : i32, i32
  }
  func.func @transform_8(%arg0: i32) -> (i32, i32) {
    %c0_i32 = arith.constant 0 : i32
    %c0_i32_0 = arith.constant 0 : i32
    %c0_i32_1 = arith.constant 0 : i32
    return %c0_i32, %c0_i32_0 : i32, i32
  }
  func.func @transform_9(%arg0: i32) -> (i32, i32) {
    %c0_i32 = arith.constant 0 : i32
    %c0_i32_0 = arith.constant 0 : i32
    return %arg0, %c0_i32 : i32, i32
  }
}

</mosaic_0001>

<bundles_post_ra>
// kernel: tpu_custom_call.1
= control target key start
LH: loop header
LB: loop body
LE: loop exit
PB: predicated region body
PF: predicated region fallthrough
CT: control target
= control target key end

     0   :  { %14 = vsyncpa [#allocation3], 0  ;;  %s797_s0 = inlined_call_operand.vmem [shape: f32[16,4], index: 0, kind: input, shape index: {}]   ;;  %s798_s1 = inlined_call_operand.hbm [shape: f32[4,32], index: 1, kind: input, shape index: {}]   ;;  %s799_s2 = inlined_call_operand.hbm [shape: f32[1,32], index: 2, kind: input, shape index: {}]   ;;  %s800_s3 = inlined_call_operand.vmem [shape: f32[32,32], index: 3, kind: input, shape index: {}]   ;;  %s801_s4 = inlined_call_operand.hbm [shape: f32[1,32], index: 4, kind: input, shape index: {}]   ;;  %s802_s5 = inlined_call_operand.vmem [shape: f32[32,32], index: 5, kind: input, shape index: {}]   ;;  %s803_s6 = inlined_call_operand.hbm [shape: f32[1,32], index: 6, kind: input, shape index: {}]   ;;  %s804_s7 = inlined_call_operand.vmem [shape: f32[32,4], index: 7, kind: input, shape index: {}]   ;;  %s805_s8 = inlined_call_operand.vmem [shape: f32[1,4], index: 8, kind: input, shape index: {}]   ;;  %s806_s9 = inlined_call_operand.vmem [shape: f32[16,8], index: 9, kind: output, shape index: {}]  }
   0x1   :  { %15 = vsyncpa [#allocation5], 0 }
   0x2   :  { %16 = vsyncpa [#allocation8], 0  ;;  %s655_s30 = smov [#allocation4]   ;;  %s656_s11 = smov [#allocation2]  }
   0x3   :  { %s35_s10 = sshll.u32 %s655_s30, 4  ;;  %s25_s12 = sshll.u32 %s656_s11, 4  ;;  %s36_s10 = int_to_ptr.vmem [resolvable:$true] %s35_s10  ;;  %s26_s12 = int_to_ptr.vmem [resolvable:$true] %s25_s12 }
   0x4   :  { %s577_s13 = scalar_lea.vmem %s36_s10, 16  ;;  %s581_s14 = scalar_lea.vmem %s36_s10, 32 }
   0x5   :  { %p578_p0 = scmp.ne.s32.totalorder %s36_s10, %s577_s13  ;;  %p582_p1 = scmp.lt.s32.totalorder %s36_s10, %s36_s10 }
   0x6   :  { %p583_p2 = scmp.lt.s32.totalorder %s581_s14, %s577_s13 }
   0x8   :  { %p584_p3 = por %p583_p2, %p582_p1 }
   0xa   :  { %p585_p4 = pnand %p584_p3, %p578_p0 }
   0xc   :  { %588 = shalt.err (!%p585_p4)
}
   0xd   :  { %38 = dma.hbm_to_vmem [thread:$0]  %s799_s2, 16, %s36_s10, [#allocation5]  }
   0xe   :  { %s597_s17 = scalar_lea.vmem %s26_s12, 64  ;;  %p602_p6 = scmp.lt.s32.totalorder %s26_s12, %s26_s12 }
   0xf   :  { %p598_p5 = scmp.ne.s32.totalorder %s26_s12, %s597_s17  ;;  %p603_p7 = scmp.lt.s32.totalorder %s597_s17, %s597_s17 }
  0x11   :  { %p604_p8 = por %p603_p7, %p602_p6 }
  0x13   :  { %p605_p9 = pnand %p604_p8, %p598_p5 }
  0x15   :  { %608 = shalt.err (!%p605_p9)
}
  0x16   :  { %28 = dma.hbm_to_vmem [thread:$0]  %s798_s1, 64, %s26_s12, [#allocation3]  }
  0x17   :  { %s657_s20 = smov [#allocation6]   ;;  %s658_s22 = smov [#allocation7]  }
  0x18   :  { %s47_s21 = sshll.u32 %s657_s20, 4  ;;  %s59_s23 = sshll.u32 %s658_s22, 4  ;;  %s48_s21 = int_to_ptr.vmem [resolvable:$true] %s47_s21  ;;  %s60_s23 = int_to_ptr.vmem [resolvable:$true] %s59_s23 }
  0x19   :  { %s617_s24 = scalar_lea.vmem %s48_s21, 16  ;;  %s621_s2 = scalar_lea.vmem %s48_s21, 32 }
  0x1a   :  { %p618_p10 = scmp.ne.s32.totalorder %s48_s21, %s617_s24  ;;  %p622_p11 = scmp.lt.s32.totalorder %s48_s21, %s48_s21 }
  0x1b   :  { %p623_p12 = scmp.lt.s32.totalorder %s621_s2, %s617_s24 }
  0x1d   :  { %p624_p13 = por %p623_p12, %p622_p11 }
  0x1f   :  { %p625_p0 = pnand %p624_p13, %p618_p10 }
  0x21   :  { %628 = shalt.err (!%p625_p0)
}
  0x22   :  { %50 = dma.hbm_to_vmem [thread:$0]  %s801_s4, 16, %s48_s21, [#allocation5]  }
  0x23   :  { %s637_s27 = scalar_lea.vmem %s60_s23, 16  ;;  %s641_s1 = scalar_lea.vmem %s60_s23, 32 }
  0x24   :  { %p638_p1 = scmp.ne.s32.totalorder %s60_s23, %s637_s27  ;;  %p642_p2 = scmp.lt.s32.totalorder %s60_s23, %s60_s23 }
  0x25   :  { %p643_p3 = scmp.lt.s32.totalorder %s641_s1, %s637_s27 }
  0x27   :  { %p644_p4 = por %p643_p3, %p642_p2 }
  0x29   :  { %p645_p5 = pnand %p644_p4, %p638_p1 }
  0x2b   :  { %648 = shalt.err (!%p645_p5)
}
  0x2c   :  { %62 = dma.hbm_to_vmem [thread:$0]  %s803_s6, 16, %s60_s23, [#allocation8]  }
  0x2d   :  { %649 = dma.done.wait [#allocation3], 64  }
  0x2e   :  { %650 = vsyncadd [#allocation3], 4294967232 }
  0x2f   :  { %651 = dma.done.wait [#allocation5], 32  }
  0x30   :  { %652 = vsyncadd [#allocation5], 4294967264 }
  0x31   :  { %653 = dma.done.wait [#allocation8], 16  }
  0x32   :  { %654 = vsyncadd [#allocation8], 4294967280  ;;  %vm96_vm0 = vcmask 1043456   ;;  %vm89_vm1 = vcmask 31744   ;;  %v81_v0 = vld [vmem:[#allocation2] sm:$0xf] }
  0x33   :  { %v725_v1 = vld [vmem:[%s797_s0] sm:$0xff]  ;;  %v730_v2 = vld [vmem:[%s797_s0 + $0x8] sm:$0xff]  ;;  %522 = vmatprep.subr.msk.mxu0 %vm96_vm0, %v81_v0  ;;  %v180_v3 = vld [vmem:[%s800_s3 + $0x18] sm:$0xff]  ;;  %vm188_vm2 = vcmask 261120   ;;  %vm478_vm3 = vcmask 64544  }
  0x34   :  { %524 = vmatprep.mubr.msk.f32.mxu0 %vm89_vm1, %v725_v1  ;;  %523 = vmatpush3.msk.msra.mxu0 %vm96_vm0, %v81_v0  ;;  %v179_v4 = vld [vmem:[%s800_s3 + $0x10] sm:$0xff]  ;;  %v178_v5 = vld [vmem:[%s800_s3 + $0x8] sm:$0xff]  ;;  %v177_v6 = vld [vmem:[%s800_s3] sm:$0xff] }
  0x35   :  { %525 = vmatmul.mubr.msk.f32.vlgmr.msra.gmra.mxu0 %vm89_vm1, %v730_v2  ;;  %527 = vmatprep.subr.mxu1 %v180_v3  ;;  %v488_v7 = vld [vmem:[#allocation4] ss:$0 sm:$0xff]  ;;  %v275_v14 = vld [vmem:[%s802_s5 + $0x18] sm:$0xff]  ;;  %v274_v15 = vld [vmem:[%s802_s5 + $0x10] sm:$0xff] }
  0x36   :  { %528 = vmatpush3.msra.mxu1 %v180_v3  ;;  %538 = vmatprep.subr.mxu0 %v275_v14  ;;  %v273_v16 = vld [vmem:[%s802_s5 + $0x8] sm:$0xff]  ;;  %v272_v17 = vld [vmem:[%s802_s5] sm:$0xff]  ;;  %v369_v25 = vld [vmem:[%s804_s7 + $0x18] sm:$0xff] }
  0x37   :  { %529 = vmatprep.subr.mxu1 %v179_v4  ;;  %539 = vmatpush3.msra.mxu0 %v275_v14  ;;  %v492_v18 = vld [vmem:[#allocation6] ss:$0 sm:$0xff]  ;;  %v368_v26 = vld [vmem:[%s804_s7 + $0x10] sm:$0xff]  ;;  %v367_v27 = vld [vmem:[%s804_s7 + $0x8] sm:$0xff] }
  0x38   :  { %530 = vmatpush3.msra.mxu1 %v179_v4  ;;  %540 = vmatprep.subr.mxu0 %v274_v15  ;;  %v366_v28 = vld [vmem:[%s804_s7] sm:$0xff]  ;;  %v495_v29 = vld [vmem:[#allocation7] ss:$0 sm:$0xff]  ;;  %s659_s7 = smov 4  }
  0x39   :  { %531 = vmatprep.subr.mxu1 %v178_v5  ;;  %541 = vmatpush3.msra.mxu0 %v274_v15  ;;  %v498_v36 = vld [vmem:[%s805_s8] ss:$0 sm:$0xff] }
  0x3a   :  { %532 = vmatpush3.msra.mxu1 %v178_v5  ;;  %542 = vmatprep.subr.mxu0 %v273_v16 }
  0x3b   :  { %533 = vmatprep.subr.mxu1 %v177_v6  ;;  %543 = vmatpush3.msra.mxu0 %v273_v16 }
  0x3c   :  { %534 = vmatpush3.msra.mxu1 %v177_v6  ;;  %544 = vmatprep.subr.mxu0 %v272_v17 }
  0x3d   :  { %545 = vmatpush3.msra.mxu0 %v272_v17  ;;  %549 = vmatprep.subr.mxu1 %v369_v25 }
  0xf5   :  { %v526_v8 = vpop.f32.mrf.mxu0 }
  0xf6   :  { %v172_v9 = vadd.f32 %v526_v8, %v488_v7 }
  0xf7   :  { %v166_v10 = vpop.f32.mrf.mxu0 }
  0xf8   :  { %v167_v11 = vadd.f32 %v488_v7, %v166_v10  ;;  %v176_v13 = vmax.f32 %v172_v9, 0.0 }
  0xfa   :  { %v175_v12 = vmax.f32 %v167_v11, 0.0 }
  0xfc   :  { %535 = vmatprep.mubr.msk.f32.mxu1 %vm188_vm2, %v175_v12 }
  0xfd   :  { %536 = vmatmul.mubr.msk.f32.vlgmr.msra.gmra.mxu1 %vm188_vm2, %v176_v13 }
  0xfe   :  { %550 = vmatpush3.msra.mxu1 %v369_v25 }
  0xff   :  { %551 = vmatprep.subr.mxu1 %v368_v26 }
 0x100   :  { %552 = vmatpush3.msra.mxu1 %v368_v26 }
 0x101   :  { %553 = vmatprep.subr.mxu1 %v367_v27 }
 0x102   :  { %554 = vmatpush3.msra.mxu1 %v367_v27 }
 0x103   :  { %555 = vmatprep.subr.mxu1 %v366_v28 }
 0x104   :  { %556 = vmatpush3.msra.mxu1 %v366_v28 }
 0x1bd   :  { %v537_v19 = vpop.f32.mrf.mxu1 }
 0x1be   :  { %v267_v20 = vadd.f32 %v537_v19, %v492_v18 }
 0x1bf   :  { %v261_v21 = vpop.f32.mrf.mxu1 }
 0x1c0   :  { %v262_v22 = vadd.f32 %v492_v18, %v261_v21  ;;  %v271_v24 = vmax.f32 %v267_v20, 0.0 }
 0x1c2   :  { %v270_v23 = vmax.f32 %v262_v22, 0.0 }
 0x1c4   :  { %546 = vmatprep.mubr.msk.f32.mxu0 %vm188_vm2, %v270_v23 }
 0x1c5   :  { %547 = vmatmul.mubr.msk.f32.vlgmr.msra.gmra.mxu0 %vm188_vm2, %v271_v24 }
 0x285   :  { %v548_v30 = vpop.f32.mrf.mxu0 }
 0x286   :  { %v361_v31 = vadd.f32 %v548_v30, %v495_v29 }
 0x287   :  { %v355_v32 = vpop.f32.mrf.mxu0 }
 0x288   :  { %v356_v33 = vadd.f32 %v495_v29, %v355_v32  ;;  %v365_v35 = vmax.f32 %v361_v31, 0.0 }
 0x28a   :  { %v364_v34 = vmax.f32 %v356_v33, 0.0 }
 0x28c   :  { %557 = vmatprep.mubr.msk.f32.mxu1 %vm188_vm2, %v364_v34 }
 0x28d   :  { %558 = vmatmul.mubr.msk.f32.vlgmr.msra.gmra.mxu1 %vm188_vm2, %v365_v35 }
 0x34d   :  { %v559_v37 = vpop.f32.mrf.mxu1 }
 0x34e   :  { %v455_v38 = vadd.f32 %v559_v37, %v498_v36 }
 0x34f   :  { %v449_v39 = vpop.f32.mrf.mxu1 }
 0x350   :  { %v460_v40 = vmul.f32 1.442695, %v455_v38  ;;  %v450_v41 = vadd.f32 %v498_v36, %v449_v39 }
 0x352   :  { %565 = vpow2.f32 %v460_v40  ;;  %v458_v42 = vmul.f32 1.442695, %v450_v41 }
 0x354   :  { %567 = vpow2.f32 %v458_v42 }
 0x35f   :  { %v566_v43 = vpop.eup %565 }
 0x360   :  { %v463_v44 = vmul.f32 2.0, %v566_v43  ;;  %v469_v50 = vsub.f32 0.0, %v566_v43 }
 0x361   :  { %v568_v45 = vpop.eup %567 }
 0x362   :  { %v468_v46 = vsub.f32 0.0, %v568_v45  ;;  %v462_v47 = vmul.f32 2.0, %v568_v45  ;;  %v465_v48 = vmul.f32 %v463_v44, %v730_v2 }
 0x364   :  { %472 = vrot.lane.b32.xlu0 %v468_v46, %s659_s7  ;;  %v464_v49 = vmul.f32 %v462_v47, %v725_v1  ;;  %467 = vst.msk [vmem:[%s806_s9 + $0x8] sm:$0xff] %vm89_vm1, %v465_v48 }
 0x366   :  { %466 = vst.msk [vmem:[%s806_s9] sm:$0xff] %vm89_vm1, %v464_v49 }
 0x368   :  { %474 = vrot.lane.b32.xlu0 %v469_v50, %s659_s7 }
 0x3d6   :  { %v473_v51 = vpop.permute.xlu0 %472 }
 0x3d7   :  { %479 = vst.msk [vmem:[%s806_s9] sm:$0xff] %vm478_vm3, %v473_v51 }
 0x3da   :  { %v475_v52 = vpop.permute.xlu0 %474 }
 0x3db   :  { %480 = vst.msk [vmem:[%s806_s9 + $0x8] sm:$0xff] %vm478_vm3, %v475_v52 }
 0x3dc   :  { %485 = vsyncpa [#allocation3], 1 }
 0x3dd   :  { %486 = vsyncpa [#allocation5], 1 }
 0x3de   :  { %487 = vsyncpa [#allocation8], 1 }

</bundles_post_ra>
